<compile_context>
chip_gen: v7x
topology: tpu7x:2x2x1
jax: 0.10.0
libtpu: 0.0.40
codegen_flags: <defaults>
</compile_context>

<pallas_src>
import jax
import jax.numpy as jnp
from jax import lax
from jax.experimental import pallas as pl
from jax.experimental.pallas import tpu as pltpu

_LANE = 128
_F32_BYTES = 4


def mlp_kernel(x_ref, w_ref, b_ref, o_ref):
    x = x_ref[...]                      # (tile_b, D) f32, VMEM
    w = w_ref[...]                      # (1, D)      f32, VMEM (resident)
    b = b_ref[0, 0]                     # scalar bias from SMEM
    # MXU matvec producing a lane-dense row: z[0, r] = sum_d w[0, d] * x[r, d].
    z = lax.dot_general(
        w, x,
        dimension_numbers=(((1,), (1,)), ((), ())),
        preferred_element_type=jnp.float32,
    ) + b                               # (1, tile_b) f32
    # sigmoid(z) = 1 / (1 + exp(-z)): exp on the EUP, divide as EUP reciprocal.
    o_ref[...] = pl.reciprocal(1.0 + jnp.exp(-z), approx=True).astype(o_ref.dtype)


def _choose_tile_b(B, D, target_block_bytes):
    """Lane-aligned batch tile targeting ~target_block_bytes per x block."""
    d_pad = pl.cdiv(D, _LANE) * _LANE                  # lane-padded row width
    rows = target_block_bytes // (_F32_BYTES * d_pad)
    tile_b = max(_LANE, (rows // _LANE) * _LANE)       # multiple of 128
    # Keep >=2 grid steps when B is big enough, so v7x's two TensorCores both
    # get work from the "parallel" batch axis.
    if B >= 2 * _LANE:
        half = pl.cdiv(pl.cdiv(B, 2), _LANE) * _LANE
        tile_b = min(tile_b, half)
    if tile_b >= B:
        tile_b = B                                     # single full block
    return tile_b, d_pad


def mlp_1l_1n(x, w, b, *, target_block_bytes=2 * 1024 * 1024):
    """Forward of MLP_1L_1n: sigmoid(x @ w.T + b).

    x: (B, D) float32
    w: (1, D) float32   (PyTorch fc1.weight, native layout)
    b: (1, 1) float32   (PyTorch fc1.bias reshaped to (1, 1))
    returns: (B, 1) float32
    """
    B, D = x.shape
    assert w.shape == (1, D)
    assert b.shape == (1, 1)

    tile_b, d_pad = _choose_tile_b(B, D, target_block_bytes)
    grid = (pl.cdiv(B, tile_b),)

    # Double-buffered VMEM footprint (sublane/lane padded). Only raise the
    # scoped limit when a large-D block actually needs it.
    x_block = max(tile_b, 8) * d_pad * _F32_BYTES
    w_block = 8 * d_pad * _F32_BYTES
    o_block = 8 * max(pl.cdiv(tile_b, _LANE) * _LANE, _LANE) * _F32_BYTES
    vmem_needed = 2 * (x_block + w_block + o_block) + (1 << 20)   # + headroom
    vmem_limit = None
    if vmem_needed > 32 * 1024 * 1024:
        vmem_limit = min(vmem_needed, 100 * 1024 * 1024)

    out_row = pl.pallas_call(
        mlp_kernel,
        out_shape=jax.ShapeDtypeStruct((1, B), jnp.float32),
        grid_spec=pl.GridSpec(
            grid=grid,
            in_specs=[
                # x: tiled over batch, full feature dim per tile.
                pl.BlockSpec((tile_b, D), lambda i: (i, 0)),
                # w: same (1, D) block every step (stays resident in VMEM).
                pl.BlockSpec((1, D), lambda i: (0, 0)),
                # bias: whole array in SMEM, read as a scalar.
                pl.BlockSpec(memory_space=pltpu.MemorySpace.SMEM),
            ],
            # Lane-dense output row: unmasked 128-wide stores.
            out_specs=pl.BlockSpec((1, tile_b), lambda i: (0, i)),
        ),
        compiler_params=pltpu.CompilerParams(
            dimension_semantics=("parallel",),       # megacore split on v7x
            vmem_limit_bytes=vmem_limit,
        ),
    )(x, w, b)

    # (1, B) is contiguous -> reshaping to the module's (B, 1) output is free.
    return out_row.reshape(B, 1)


if __name__ == "__main__":
    key = jax.random.PRNGKey(0)
    B, D = 8, 32  # batch=8, input_dim=32

    kx, kw, kb = jax.random.split(key, 3)
    x = jax.random.normal(kx, (B, D), dtype=jnp.float32)

    # Deterministic init matching nn.Linear's U(-1/sqrt(D), 1/sqrt(D)) scheme.
    bound = 1.0 / jnp.sqrt(jnp.float32(D))
    w = jax.random.uniform(kw, (1, D), dtype=jnp.float32, minval=-bound, maxval=bound)
    b = jax.random.uniform(kb, (1, 1), dtype=jnp.float32, minval=-bound, maxval=bound)

    out = mlp_1l_1n(x, w, b)
    jax.block_until_ready(out)

    # Reference (same math as the PyTorch module). Tolerance covers MXU f32
    # accumulation passes and the approximate EUP reciprocal in the sigmoid.
    ref = jax.nn.sigmoid(x @ w.T + b)
    assert out.shape == (B, 1)
    assert jnp.allclose(out, ref, atol=5e-3, rtol=0), "mismatch vs reference"

    print("KERNEL_OK")
</pallas_src>

<mosaic_0001>
module attributes {stable_mosaic.version = 11 : i64} {
  func.func @mlp_kernel(%arg0: i32, %arg1: memref<8x32xf32, #tpu.memory_space<vmem>>, %arg2: memref<1x32xf32, #tpu.memory_space<vmem>>, %arg3: memref<1x1xf32, #tpu.memory_space<smem>>, %arg4: memref<1x8xf32, #tpu.memory_space<vmem>>) attributes {dimension_semantics = [#tpu.dimension_semantics<parallel>], iteration_bounds = array<i64: 1>, scalar_prefetch = 0 : i64, scratch_operands = 0 : i64, tpu.core_type = #tpu.core_type<tc>, window_params = [{transform_indices = @transform_0, window_bounds = array<i64: 8, 32>}, {pipeline_mode = #tpu.pipeline_mode<synchronous>, transform_indices = @transform_1, window_bounds = array<i64: 1, 32>}, {transform_indices = @transform_2, window_bounds = array<i64: 1, 1>}, {transform_indices = @transform_3, window_bounds = array<i64: 1, 8>}]} {
    %c0 = arith.constant 0 : index
    %c0_0 = arith.constant 0 : index
    %0 = vector.load %arg1[%c0, %c0_0] : memref<8x32xf32, #tpu.memory_space<vmem>>, vector<8x32xf32>
    %c0_1 = arith.constant 0 : index
    %c0_2 = arith.constant 0 : index
    %1 = vector.load %arg2[%c0_1, %c0_2] : memref<1x32xf32, #tpu.memory_space<vmem>>, vector<1x32xf32>
    %c0_3 = arith.constant 0 : index
    %c0_4 = arith.constant 0 : index
    %2 = memref.load %arg3[%c0_3, %c0_4] : memref<1x1xf32, #tpu.memory_space<smem>>
    %cst = arith.constant dense<0.000000e+00> : vector<1x8xf32>
    %3 = tpu.matmul %1, %0, %cst {dimension_numbers = #tpu.dot_dimension_numbers<[1], [1], [0], [0], [0, 0, 1, 0], [], []>} : vector<1x32xf32>, vector<8x32xf32>, vector<1x8xf32> -> vector<1x8xf32>
    %4 = vector.broadcast %2 : f32 to vector<1x8xf32>
    %5 = arith.addf %3, %4 : vector<1x8xf32>
    %cst_5 = arith.constant 0.000000e+00 : f32
    %6 = vector.broadcast %cst_5 : f32 to vector<1x8xf32>
    %7 = arith.subf %6, %5 : vector<1x8xf32>
    %8 = math.exp %7 : vector<1x8xf32>
    %cst_6 = arith.constant 1.000000e+00 : f32
    %9 = vector.broadcast %cst_6 : f32 to vector<1x8xf32>
    %10 = arith.addf %9, %8 : vector<1x8xf32>
    %11 = tpu.reciprocal %10 {approx = true} : vector<1x8xf32> -> vector<1x8xf32>
    %c0_7 = arith.constant 0 : index
    %c0_8 = arith.constant 0 : index
    %12 = vector.load %arg4[%c0_7, %c0_8] : memref<1x8xf32, #tpu.memory_space<vmem>>, vector<1x8xf32>
    tpu.vector_store %arg4[%c0_7, %c0_8], %11 {strides = array<i32>} : memref<1x8xf32, #tpu.memory_space<vmem>>, vector<1x8xf32>,
    return
  }
  func.func @transform_0(%arg0: i32) -> (i32, i32) {
    %c0_i32 = arith.constant 0 : i32
    %c0_i32_0 = arith.constant 0 : i32
    return %arg0, %c0_i32 : i32, i32
  }
  func.func @transform_1(%arg0: i32) -> (i32, i32) {
    %c0_i32 = arith.constant 0 : i32
    %c0_i32_0 = arith.constant 0 : i32
    %c0_i32_1 = arith.constant 0 : i32
    return %c0_i32, %c0_i32_0 : i32, i32
  }
  func.func @transform_2(%arg0: i32) -> (i32, i32) {
    %c0_i32 = arith.constant 0 : i32
    %c0_i32_0 = arith.constant 0 : i32
    %c0_i32_1 = arith.constant 0 : i32
    return %c0_i32, %c0_i32_0 : i32, i32
  }
  func.func @transform_3(%arg0: i32) -> (i32, i32) {
    %c0_i32 = arith.constant 0 : i32
    %c0_i32_0 = arith.constant 0 : i32
    return %c0_i32, %arg0 : i32, i32
  }
}

</mosaic_0001>

<bundles_post_ra>
// kernel: tpu_custom_call.1
= control target key start
LH: loop header
LB: loop body
LE: loop exit
PB: predicated region body
PF: predicated region fallthrough
CT: control target
= control target key end

     0   :  { %9 = vsyncpa [#allocation4], 0  ;;  %s250_s0 = inlined_call_operand.hbm [shape: f32[8,32], index: 0, kind: input, shape index: {}]   ;;  %s251_s1 = inlined_call_operand.vmem [shape: f32[1,32], index: 1, kind: input, shape index: {}]   ;;  %s252_s2 = inlined_call_operand.<no memory space> [shape: f32[1,1], index: 2, kind: input, shape index: {}]   ;;  %s253_s3 = inlined_call_operand.hbm [shape: f32[1,8], index: 3, kind: output, shape index: {}]  }
   0x1   :  { %10 = vsyncpa [#allocation5], 0  ;;  %s196_s12 = smov [#allocation3]   ;;  %s148_s16 = scalar_lea.hbm %s250_s0, 128 }
   0x2   :  { %s17_s13 = sshll.u32 %s196_s12, 4  ;;  %p149_p0 = scmp.ne.s32.totalorder %s250_s0, %s148_s16  ;;  %s18_s13 = int_to_ptr.vmem [resolvable:$true] %s17_s13 }
   0x3   :  { %p152_p1 = scmp.lt.u32.totalorder %s148_s16, %s250_s0 }
   0x5   :  { %p154_p2 = pnand %p152_p1, %p149_p0 }
   0x7   :  { %157 = shalt.err (!%p154_p2)
}
   0x8   :  { %s158_s21 = scalar_lea.vmem %s18_s13, 128  ;;  %p163_p4 = scmp.lt.s32.totalorder %s18_s13, %s18_s13 }
   0x9   :  { %p159_p3 = scmp.ne.s32.totalorder %s18_s13, %s158_s21  ;;  %p164_p5 = scmp.lt.s32.totalorder %s158_s21, %s158_s21 }
   0xb   :  { %p165_p6 = por %p164_p5, %p163_p4 }
   0xd   :  { %p166_p7 = pnand %p165_p6, %p159_p3 }
   0xf   :  { %169 = shalt.err (!%p166_p7)
}
  0x10   :  { %20 = dma.hbm_to_vmem [thread:$0]  %s250_s0, 128, %s18_s13, [#allocation4]  }
  0x11   :  { %192 = dma.done.wait [#allocation4], 128  }
  0x12   :  { %193 = vsyncadd [#allocation4], 4294967168  ;;  %v197_v0 = vmov 0.0   ;;  %vm198_vm0 = vmmov 0   ;;  %vm32_vm1 = vcmask 261120   ;;  %v28_v1 = vld [vmem:[#allocation3] sm:$0xff]  ;;  %v31_v3 = vstv %s252_s2 }
  0x13   :  { %135 = vmatprep.subr.mxu0 %v197_v0  ;;  %137 = vmatprep.mubr.msk.f32.mxu0 %vm198_vm0, %v197_v0  ;;  %v29_v2 = vld [vmem:[%s251_s1] sm:$0x1]  ;;  %s199_s0 = smov [#allocation6]   ;;  %vm114_vm2 = vcmask 57344  }
  0x14   :  { %136 = vmatpush3.xpose.msk.msra.mxu0 %vm32_vm1, %v28_v1  ;;  %s122_s28 = sshll.u32 %s199_s0, 4  ;;  %s123_s28 = int_to_ptr.vmem [resolvable:$true] %s122_s28 }
  0x15   :  { %s170_s1 = scalar_lea.vmem %s123_s28, 16  ;;  %s174_s29 = scalar_lea.vmem %s123_s28, 32 }
  0x16   :  { %p171_p8 = scmp.ne.s32.totalorder %s123_s28, %s170_s1  ;;  %p175_p9 = scmp.lt.s32.totalorder %s123_s28, %s123_s28 }
  0x17   :  { %138 = vmatmul.mubr.msk.f32.vlgmr.msra.gmra.mrb[0].mxu0 %vm32_vm1, %v29_v2  ;;  %p176_p10 = scmp.lt.s32.totalorder %s174_s29, %s170_s1 }
  0x19   :  { %p177_p11 = por %p176_p10, %p175_p9 }
  0x1b   :  { %p178_p12 = pnand %p177_p11, %p171_p8 }
  0xea   :  { %v105_v4 = vpop.f32.mrb[0].mxu0 }
  0xeb   :  { %v106_v5 = vadd.f32 %v105_v4, %v31_v3  ;;  %v139_v6 = vpop.f32.mrb[1].mxu0 }
  0xed   :  { %v109_v7 = vsub.f32 0.0, %v106_v5 }
  0xef   :  { %v110_v8 = vmul.f32 1.442695, %v109_v7 }
  0xf1   :  { %144 = vpow2.f32 %v110_v8 }
  0xfb   :  { %v145_v9 = vpop.eup %144 }
  0xfc   :  { %v112_v10 = vadd.f32 1.0, %v145_v9 }
  0xfe   :  { %146 = vrcp.f32 %v112_v10 }
 0x108   :  { %v147_v11 = vpop.eup %146 }
 0x109   :  { %115 = vst.msk [vmem:[#allocation6] sm:$0x1] %vm114_vm2, %v147_v11 }
 0x10a   :  { %181 = shalt.err (!%p178_p12)
}
 0x10b   :  { %s182_s4 = scalar_lea.hbm %s253_s3, 16 }
 0x10c   :  { %p183_p13 = scmp.ne.s32.totalorder %s253_s3, %s182_s4  ;;  %p186_p0 = scmp.lt.u32.totalorder %s182_s4, %s253_s3 }
 0x10e   :  { %p188_p1 = pnand %p186_p0, %p183_p13 }
 0x110   :  { %191 = shalt.err (!%p188_p1)
}
 0x111   :  { %125 = dma.vmem_to_hbm [thread:$0]  %s123_s28, 16, %s253_s3, [#allocation5]  }
 0x112   :  { %194 = dma.done.wait [#allocation5], 16  }
 0x113   :  { %195 = vsyncadd [#allocation5], 4294967280 }
 0x114   :  { %129 = vsyncpa [#allocation4], 1 }
 0x115   :  { %130 = vsyncpa [#allocation5], 1 }

</bundles_post_ra>
